<compile_context>
chip_gen: v7x
topology: tpu7x:2x2x1
jax: 0.10.0
libtpu: 0.0.40
codegen_flags: <defaults>
</compile_context>

<pallas_src>
import functools

import jax
import jax.numpy as jnp
from jax.experimental import pallas as pl
from jax.experimental.pallas import tpu as pltpu


def _round_up(x, m):
    return ((x + m - 1) // m) * m


def _mlp_kernel(xT_ref, w1_ref, b1_ref, w2_ref, b2_ref, out_ref, *, compute_dtype):
    # fc1: (H, F) @ (F, TB) -> (H, TB) on the MXU, f32 accumulation.
    x = xT_ref[...].astype(compute_dtype)
    w1 = w1_ref[...].astype(compute_dtype)
    h = jnp.dot(w1, x, preferred_element_type=jnp.float32)
    h = jnp.maximum(h + b1_ref[...].astype(jnp.float32), 0.0)   # bias + ReLU in f32
    # fc2: (A, H) @ (H, TB) -> (A, TB); lane-dense store (last dim = TB).
    w2 = w2_ref[...].astype(compute_dtype)
    q = jnp.dot(w2, h.astype(compute_dtype), preferred_element_type=jnp.float32)
    out_ref[...] = (q + b2_ref[...].astype(jnp.float32)).astype(out_ref.dtype)


def linear_dqn_forward_fb(xT, w1, b1, w2, b2, *, tile_b=4096,
                          compute_dtype=jnp.bfloat16, out_dtype=jnp.float32):
    """Zero-copy core: xT is (F, B) (batch on lanes); returns Q^T of shape (A, B).

    Store states as (F, B) (ideally bf16) upstream and take argmax over axis 0
    downstream to avoid all wrapper-side transposes.
    w1: (H, F), b1: (H,), w2: (A, H), b2: (A,)  -- PyTorch nn.Linear layout.
    """
    F, B = xT.shape
    H, F_ = w1.shape
    A, H_ = w2.shape
    assert F == F_ and H == H_, "weight shapes inconsistent with state"

    # Batch tile: lane-dense multiple of 128, as large as possible (per-step
    # overhead dominates this tiny MLP).  If the whole batch would fit in a
    # single step but spans >=2 lane-groups, split it in two so the "parallel"
    # grid axis can shard across v7x's 2 TensorCores (no-op on v5e/v6e).
    B128 = _round_up(B, 128)
    TB = min(_round_up(tile_b, 128), B128)
    if B128 >= 256 and TB >= B128:
        TB = ((B128 // 128 + 1) // 2) * 128
    grid = (pl.cdiv(B, TB),)

    b1c = b1.reshape(H, 1)
    b2c = b2.reshape(A, 1)

    x_bytes = jnp.dtype(xT.dtype).itemsize
    o_bytes = jnp.dtype(out_dtype).itemsize
    w_bytes = (w1.size * jnp.dtype(w1.dtype).itemsize
               + b1.size * jnp.dtype(b1.dtype).itemsize
               + w2.size * jnp.dtype(w2.dtype).itemsize
               + b2.size * jnp.dtype(b2.dtype).itemsize)

    # Explicit VMEM budget (portable to v7x's 64 MiB chip): double-buffered
    # streamed x/out tiles + (double-buffered) resident weights, with headroom.
    vmem_needed = 2 * TB * (F * x_bytes + A * o_bytes) + 2 * w_bytes
    vmem_limit = int(min(max(2 * vmem_needed, 8 << 20), 64 << 20))

    cost = pl.CostEstimate(
        flops=2 * B * H * (F + A),
        transcendentals=0,
        bytes_accessed=int(xT.size * x_bytes + w_bytes + A * B * o_bytes),
    )

    kernel = functools.partial(_mlp_kernel, compute_dtype=compute_dtype)

    qT = pl.pallas_call(
        kernel,
        out_shape=jax.ShapeDtypeStruct((A, B), out_dtype),
        grid=grid,
        in_specs=[
            pl.BlockSpec((F, TB), lambda i: (0, i)),   # state tiles, streamed
            pl.BlockSpec((H, F), lambda i: (0, 0)),    # fc1 weight, resident
            pl.BlockSpec((H, 1), lambda i: (0, 0)),    # fc1 bias,   resident
            pl.BlockSpec((A, H), lambda i: (0, 0)),    # fc2 weight, resident
            pl.BlockSpec((A, 1), lambda i: (0, 0)),    # fc2 bias,   resident
        ],
        out_specs=pl.BlockSpec((A, TB), lambda i: (0, i)),
        compiler_params=pltpu.CompilerParams(
            dimension_semantics=("parallel",),
            vmem_limit_bytes=vmem_limit),
        cost_estimate=cost,
    )(xT, w1, b1c, w2, b2c)
    return qT


def linear_deep_q_network_forward(state, w1, b1, w2, b2, *, tile_b=4096,
                                  compute_dtype=jnp.bfloat16):
    """PyTorch-compatible forward: state (B, F) -> Q-values (B, A).

    The transpose is required to put the batch on lanes; the compute-dtype cast
    is fused into that copy so the kernel's x HBM stream is half-width.
    Consumers that can work with (A, B) / (F, B) layouts should call
    `linear_dqn_forward_fb` directly and skip both transposes.
    """
    xT = state.T.astype(compute_dtype)
    qT = linear_dqn_forward_fb(xT, w1, b1, w2, b2, tile_b=tile_b,
                               compute_dtype=compute_dtype)
    return qT.T


def init_params(key, in_features, hidden, n_actions):
    """nn.Linear-style U(-1/sqrt(fan_in), 1/sqrt(fan_in)) init, PyTorch (out, in) layout."""
    k1, k2, k3, k4 = jax.random.split(key, 4)
    bound1 = 1.0 / jnp.sqrt(in_features)
    bound2 = 1.0 / jnp.sqrt(hidden)
    w1 = jax.random.uniform(k1, (hidden, in_features), jnp.float32,
                            minval=-bound1, maxval=bound1)
    b1 = jax.random.uniform(k2, (hidden,), jnp.float32,
                            minval=-bound1, maxval=bound1)
    w2 = jax.random.uniform(k3, (n_actions, hidden), jnp.float32,
                            minval=-bound2, maxval=bound2)
    b2 = jax.random.uniform(k4, (n_actions,), jnp.float32,
                            minval=-bound2, maxval=bound2)
    return w1, b1, w2, b2


def _reference_forward(state, w1, b1, w2, b2):
    hi = jax.lax.Precision.HIGHEST
    h = jnp.maximum(jnp.dot(state, w1.T, precision=hi) + b1, 0.0)
    return jnp.dot(h, w2.T, precision=hi) + b2


if __name__ == "__main__":
    # Small shapes consistent with the module: input_dims=(16,), n_actions=4.
    batch = 8
    in_features = 16
    hidden = 128
    n_actions = 4

    key = jax.random.PRNGKey(0)
    k_state, k_params, k_big = jax.random.split(key, 3)
    state = jax.random.normal(k_state, (batch, in_features), jnp.float32)
    w1, b1, w2, b2 = init_params(k_params, in_features, hidden, n_actions)
    ref = _reference_forward(state, w1, b1, w2, b2)

    # 1) Exact-semantics check: f32 compute path.
    q_f32 = jax.block_until_ready(
        linear_deep_q_network_forward(state, w1, b1, w2, b2,
                                      compute_dtype=jnp.float32))
    assert q_f32.shape == (batch, n_actions)
    assert jnp.allclose(q_f32, ref, atol=5e-3, rtol=5e-3)

    # 2) Default bf16-matmul path (f32 accumulation, f32 bias/ReLU).
    q_bf16 = jax.block_until_ready(
        linear_deep_q_network_forward(state, w1, b1, w2, b2))
    assert q_bf16.shape == (batch, n_actions)
    assert jnp.allclose(q_bf16, ref, atol=3e-2, rtol=3e-2)

    # 3) Multi-tile + ragged batch (grid > 1, last tile partially out of bounds).
    state2 = jax.random.normal(k_big, (300, in_features), jnp.float32)
    ref2 = _reference_forward(state2, w1, b1, w2, b2)
    q2 = jax.block_until_ready(
        linear_deep_q_network_forward(state2, w1, b1, w2, b2, tile_b=128))
    assert q2.shape == (300, n_actions)
    assert jnp.allclose(q2, ref2, atol=3e-2, rtol=3e-2)

    # 4) Zero-copy (F,B)->(A,B) path; batch auto-split into a 2-step grid
    #    (exercises the v7x dual-TensorCore sharding branch).
    state3 = jax.random.normal(k_big, (512, in_features), jnp.float32)
    xT3 = state3.T.astype(jnp.bfloat16)          # caller-side (F, B) bf16 storage
    ref3 = _reference_forward(state3, w1, b1, w2, b2)
    q3T = jax.block_until_ready(linear_dqn_forward_fb(xT3, w1, b1, w2, b2))
    assert q3T.shape == (n_actions, 512)
    assert jnp.allclose(q3T.T, ref3, atol=3e-2, rtol=3e-2)

    # TODO(synk): optimizer (Adam), MSELoss and .to(device) are host/training
    # machinery outside forward(); not implemented as kernels.
    print("KERNEL_OK")
</pallas_src>

<mosaic_0001>
module attributes {stable_mosaic.version = 11 : i64} {
  func.func @_mlp_kernel(%arg0: i32, %arg1: memref<16x128xf32, #tpu.memory_space<vmem>>, %arg2: memref<128x16xf32, #tpu.memory_space<vmem>>, %arg3: memref<128x1xf32, #tpu.memory_space<vmem>>, %arg4: memref<4x128xf32, #tpu.memory_space<vmem>>, %arg5: memref<4x1xf32, #tpu.memory_space<vmem>>, %arg6: memref<4x128xf32, #tpu.memory_space<vmem>>) attributes {dimension_semantics = [#tpu.dimension_semantics<parallel>], iteration_bounds = array<i64: 1>, scalar_prefetch = 0 : i64, scratch_operands = 0 : i64, tpu.core_type = #tpu.core_type<tc>, window_params = [{transform_indices = @transform_0, window_bounds = array<i64: 16, 128>}, {pipeline_mode = #tpu.pipeline_mode<synchronous>, transform_indices = @transform_1, window_bounds = array<i64: 128, 16>}, {pipeline_mode = #tpu.pipeline_mode<synchronous>, transform_indices = @transform_2, window_bounds = array<i64: 128, 1>}, {pipeline_mode = #tpu.pipeline_mode<synchronous>, transform_indices = @transform_3, window_bounds = array<i64: 4, 128>}, {pipeline_mode = #tpu.pipeline_mode<synchronous>, transform_indices = @transform_4, window_bounds = array<i64: 4, 1>}, {transform_indices = @transform_5, window_bounds = array<i64: 4, 128>}]} {
    %c0 = arith.constant 0 : index
    %c0_0 = arith.constant 0 : index
    %0 = vector.load %arg1[%c0, %c0_0] : memref<16x128xf32, #tpu.memory_space<vmem>>, vector<16x128xf32>
    %c0_1 = arith.constant 0 : index
    %c0_2 = arith.constant 0 : index
    %1 = vector.load %arg2[%c0_1, %c0_2] : memref<128x16xf32, #tpu.memory_space<vmem>>, vector<128x16xf32>
    %cst = arith.constant dense<0.000000e+00> : vector<128x128xf32>
    %2 = tpu.matmul %1, %0, %cst {dimension_numbers = #tpu.dot_dimension_numbers<[1], [0], [0], [1], [0, 0, 1, 1], [], []>} : vector<128x16xf32>, vector<16x128xf32>, vector<128x128xf32> -> vector<128x128xf32>
    %c0_3 = arith.constant 0 : index
    %c0_4 = arith.constant 0 : index
    %3 = vector.load %arg3[%c0_3, %c0_4] : memref<128x1xf32, #tpu.memory_space<vmem>>, vector<128x1xf32>
    %4 = vector.broadcast %3 : vector<128x1xf32> to vector<128x128xf32>
    %5 = arith.addf %2, %4 : vector<128x128xf32>
    %cst_5 = arith.constant 0.000000e+00 : f32
    %6 = vector.broadcast %cst_5 : f32 to vector<128x128xf32>
    %7 = arith.maximumf %5, %6 : vector<128x128xf32>
    %c0_6 = arith.constant 0 : index
    %c0_7 = arith.constant 0 : index
    %8 = vector.load %arg4[%c0_6, %c0_7] : memref<4x128xf32, #tpu.memory_space<vmem>>, vector<4x128xf32>
    %cst_8 = arith.constant dense<0.000000e+00> : vector<4x128xf32>
    %9 = tpu.matmul %8, %7, %cst_8 {dimension_numbers = #tpu.dot_dimension_numbers<[1], [0], [0], [1], [0, 0, 1, 1], [], []>} : vector<4x128xf32>, vector<128x128xf32>, vector<4x128xf32> -> vector<4x128xf32>
    %c0_9 = arith.constant 0 : index
    %c0_10 = arith.constant 0 : index
    %10 = vector.load %arg5[%c0_9, %c0_10] : memref<4x1xf32, #tpu.memory_space<vmem>>, vector<4x1xf32>
    %11 = vector.broadcast %10 : vector<4x1xf32> to vector<4x128xf32>
    %12 = arith.addf %9, %11 : vector<4x128xf32>
    %c0_11 = arith.constant 0 : index
    %c0_12 = arith.constant 0 : index
    %13 = vector.load %arg6[%c0_11, %c0_12] : memref<4x128xf32, #tpu.memory_space<vmem>>, vector<4x128xf32>
    tpu.vector_store %arg6[%c0_11, %c0_12], %12 {strides = array<i32>} : memref<4x128xf32, #tpu.memory_space<vmem>>, vector<4x128xf32>,
    return
  }
  func.func @transform_0(%arg0: i32) -> (i32, i32) {
    %c0_i32 = arith.constant 0 : i32
    %c0_i32_0 = arith.constant 0 : i32
    return %c0_i32, %arg0 : i32, i32
  }
  func.func @transform_1(%arg0: i32) -> (i32, i32) {
    %c0_i32 = arith.constant 0 : i32
    %c0_i32_0 = arith.constant 0 : i32
    %c0_i32_1 = arith.constant 0 : i32
    return %c0_i32, %c0_i32_0 : i32, i32
  }
  func.func @transform_2(%arg0: i32) -> (i32, i32) {
    %c0_i32 = arith.constant 0 : i32
    %c0_i32_0 = arith.constant 0 : i32
    %c0_i32_1 = arith.constant 0 : i32
    return %c0_i32, %c0_i32_0 : i32, i32
  }
  func.func @transform_3(%arg0: i32) -> (i32, i32) {
    %c0_i32 = arith.constant 0 : i32
    %c0_i32_0 = arith.constant 0 : i32
    %c0_i32_1 = arith.constant 0 : i32
    return %c0_i32, %c0_i32_0 : i32, i32
  }
  func.func @transform_4(%arg0: i32) -> (i32, i32) {
    %c0_i32 = arith.constant 0 : i32
    %c0_i32_0 = arith.constant 0 : i32
    %c0_i32_1 = arith.constant 0 : i32
    return %c0_i32, %c0_i32_0 : i32, i32
  }
  func.func @transform_5(%arg0: i32) -> (i32, i32) {
    %c0_i32 = arith.constant 0 : i32
    %c0_i32_0 = arith.constant 0 : i32
    return %c0_i32, %arg0 : i32, i32
  }
}

</mosaic_0001>

<bundles_post_ra>
// kernel: tpu_custom_call.1
= control target key start
LH: loop header
LB: loop body
LE: loop exit
PB: predicated region body
PF: predicated region fallthrough
CT: control target
= control target key end

     0   :  { %vm135_vm0 = vcmask 130048   ;;  %v610_v4 = vmov 0   ;;  %s789_s0 = inlined_call_operand.vmem [shape: f32[16,8], index: 0, kind: input, shape index: {}]   ;;  %s790_s1 = inlined_call_operand.vmem [shape: f32[128,16], index: 1, kind: input, shape index: {}]   ;;  %s791_s2 = inlined_call_operand.vmem [shape: f32[128,1], index: 2, kind: input, shape index: {}]   ;;  %s792_s3 = inlined_call_operand.vmem [shape: f32[4,128], index: 3, kind: input, shape index: {}]   ;;  %s793_s4 = inlined_call_operand.vmem [shape: f32[4,1], index: 4, kind: input, shape index: {}]   ;;  %s794_s5 = inlined_call_operand.hbm [shape: f32[4,8], index: 5, kind: output, shape index: {}]  }
   0x1   :  { %v21_v0 = vld [vmem:[%s789_s0] sm:$0xff]  ;;  %v22_v1 = vld [vmem:[%s789_s0 + $0x8] sm:$0xff]  ;;  %584 = vset.pattern.permute.xlu0 %v610_v4  ;;  %585 = vset.pattern.permute.xlu1 %v610_v4  ;;  %v25_v6 = vld [vmem:[%s790_s1 + $0x10] sm:$0xff] }
   0x2   :  { %v23_v2 = vld [vmem:[%s790_s1] sm:$0xff]  ;;  %v551_v3 = vpack.c.bf16 %v22_v1, %v21_v0  ;;  %v24_v5 = vld [vmem:[%s790_s1 + $0x8] sm:$0xff]  ;;  %v41_v8 = vld [vmem:[%s791_s2 + $0x10] sm:$0xff] }
   0x3   :  { %492 = vmatprep.mubr.msk.f32.mxu0 %vm135_vm0, %v23_v2  ;;  %v39_v7 = vld [vmem:[%s791_s2] sm:$0xff]  ;;  %v26_v9 = vld [vmem:[%s790_s1 + $0x18] sm:$0xff]  ;;  %v40_v10 = vld [vmem:[%s791_s2 + $0x8] sm:$0xff]  ;;  %67 = vperm.xlu1 %585, %v41_v8  }
   0x4   :  { %552 = vmatprep.subr.bf16.mxu0 %v551_v3  ;;  %57 = vperm.xlu0 %584, %v39_v7   ;;  %v27_v11 = vld [vmem:[%s790_s1 + $0x20] sm:$0xff]  ;;  %v42_v12 = vld [vmem:[%s791_s2 + $0x18] sm:$0xff] }
   0x5   :  { %554 = vmatpush3.bf16.msra.mxu0 %v551_v3 }
   0x8   :  { %493 = vmatmul.mubr.msk.f32.vlgmr.msra.gmra.mrb[0].mxu0 %vm135_vm0, %v24_v5  ;;  %62 = vperm.xlu0 %584, %v40_v10  }
   0x9   :  { %495 = vmatprep.mubr.msk.f32.mxu0 %vm135_vm0, %v25_v6 }
   0xc   :  { %496 = vmatmul.mubr.msk.f32.gmra.mrb[2].mxu0 %vm135_vm0, %v26_v9 }
   0xd   :  { %10 = vsyncpa [#allocation3], 0  ;;  %498 = vmatprep.mubr.msk.f32.mxu0 %vm135_vm0, %v27_v11  ;;  %v28_v13 = vld [vmem:[%s790_s1 + $0x28] sm:$0xff]  ;;  %v43_v14 = vld [vmem:[%s791_s2 + $0x20] sm:$0xff]  ;;  %72 = vperm.xlu1 %585, %v42_v12   ;;  %v611_v37 = vmov 0.0|0.0   ;;  %vm612_vm1 = vmmov 0  }
   0xe   :  { %v29_v15 = vld [vmem:[%s790_s1 + $0x30] sm:$0xff]  ;;  %v44_v16 = vld [vmem:[%s791_s2 + $0x28] sm:$0xff]  ;;  %77 = vperm.xlu0 %584, %v43_v14   ;;  %v30_v17 = vld [vmem:[%s790_s1 + $0x38] sm:$0xff]  ;;  %555 = vmatprep.subr.bf16.mxu1 %v611_v37  ;;  %v613_v38 = vmov 0.0  }
   0xf   :  { %v45_v18 = vld [vmem:[%s791_s2 + $0x30] sm:$0xff]  ;;  %v31_v19 = vld [vmem:[%s790_s1 + $0x40] sm:$0xff]  ;;  %v46_v20 = vld [vmem:[%s791_s2 + $0x38] sm:$0xff]  ;;  %548 = vmatprep.mubr.msk.f32.mxu1 %vm612_vm1, %v613_v38 }
  0x10   :  { %499 = vmatmul.mubr.msk.f32.gmra.mrb[4].mxu0 %vm135_vm0, %v28_v13  ;;  %v32_v21 = vld [vmem:[%s790_s1 + $0x48] sm:$0xff]  ;;  %v47_v22 = vld [vmem:[%s791_s2 + $0x40] sm:$0xff]  ;;  %v33_v23 = vld [vmem:[%s790_s1 + $0x50] sm:$0xff] }
  0x11   :  { %501 = vmatprep.mubr.msk.f32.mxu0 %vm135_vm0, %v29_v15  ;;  %82 = vperm.xlu1 %585, %v44_v16   ;;  %v48_v24 = vld [vmem:[%s791_s2 + $0x48] sm:$0xff]  ;;  %v34_v25 = vld [vmem:[%s790_s1 + $0x58] sm:$0xff]  ;;  %v49_v26 = vld [vmem:[%s791_s2 + $0x50] sm:$0xff] }
  0x12   :  { %87 = vperm.xlu0 %584, %v45_v18   ;;  %v35_v27 = vld [vmem:[%s790_s1 + $0x60] sm:$0xff]  ;;  %v50_v28 = vld [vmem:[%s791_s2 + $0x58] sm:$0xff]  ;;  %v36_v29 = vld [vmem:[%s790_s1 + $0x68] sm:$0xff] }
  0x13   :  { %v51_v30 = vld [vmem:[%s791_s2 + $0x60] sm:$0xff]  ;;  %v37_v31 = vld [vmem:[%s790_s1 + $0x70] sm:$0xff]  ;;  %v52_v32 = vld [vmem:[%s791_s2 + $0x68] sm:$0xff] }
  0x14   :  { %502 = vmatmul.mubr.msk.f32.gmra.mrb[6].mxu0 %vm135_vm0, %v30_v17  ;;  %v38_v33 = vld [vmem:[%s790_s1 + $0x78] sm:$0xff]  ;;  %v53_v34 = vld [vmem:[%s791_s2 + $0x70] sm:$0xff]  ;;  %v346_v36 = vld [vmem:[%s793_s4] sm:$0xf]  ;;  %s614_s4 = smov [#allocation2]  }
  0x15   :  { %504 = vmatprep.mubr.msk.f32.mxu0 %vm135_vm0, %v31_v19  ;;  %92 = vperm.xlu1 %585, %v46_v20   ;;  %v54_v35 = vld [vmem:[%s791_s2 + $0x78] sm:$0xff]  ;;  %s429_s10 = sshll.u32 %s614_s4, 4  ;;  %s430_s10 = int_to_ptr.vmem [resolvable:$true] %s429_s10 }
  0x16   :  { %97 = vperm.xlu0 %584, %v47_v22   ;;  %s586_s11 = scalar_lea.vmem %s430_s10, 64  ;;  %p591_p1 = scmp.lt.s32.totalorder %s430_s10, %s430_s10 }
  0x17   :  { %p587_p0 = scmp.ne.s32.totalorder %s430_s10, %s586_s11  ;;  %p592_p2 = scmp.lt.s32.totalorder %s586_s11, %s586_s11 }
  0x18   :  { %505 = vmatmul.mubr.msk.f32.gmra.mrb[8].mxu0 %vm135_vm0, %v32_v21 }
  0x19   :  { %507 = vmatprep.mubr.msk.f32.mxu0 %vm135_vm0, %v33_v23  ;;  %102 = vperm.xlu1 %585, %v48_v24   ;;  %p593_p3 = por %p592_p2, %p591_p1 }
  0x1a   :  { %107 = vperm.xlu0 %584, %v49_v26  }
  0x1b   :  { %p594_p4 = pnand %p593_p3, %p587_p0 }
  0x1c   :  { %508 = vmatmul.mubr.msk.f32.gmra.mrb[10].mxu0 %vm135_vm0, %v34_v25 }
  0x1d   :  { %510 = vmatprep.mubr.msk.f32.mxu0 %vm135_vm0, %v35_v27  ;;  %112 = vperm.xlu1 %585, %v50_v28  }
  0x1e   :  { %117 = vperm.xlu0 %584, %v51_v30  }
  0x20   :  { %511 = vmatmul.mubr.msk.f32.gmra.mrb[12].mxu0 %vm135_vm0, %v36_v29 }
  0x21   :  { %513 = vmatprep.mubr.msk.f32.mxu0 %vm135_vm0, %v37_v31  ;;  %122 = vperm.xlu1 %585, %v52_v32  }
  0x22   :  { %127 = vperm.xlu0 %584, %v53_v34  }
  0x24   :  { %514 = vmatmul.mubr.msk.f32.gmra.mrb[14].mxu0 %vm135_vm0, %v38_v33 }
  0x25   :  { %132 = vperm.xlu1 %585, %v54_v35  }
  0x26   :  { %349 = vperm.xlu0 %584, %v346_v36  }
  0x82   :  { %v68_v39 = vpop.permute.xlu1 %67 }
  0x83   :  { %v58_v40 = vpop.permute.xlu0 %57 }
  0x87   :  { %v63_v42 = vpop.permute.xlu0 %62 }
  0x8c   :  { %v73_v41 = vpop.permute.xlu1 %72 }
  0x8d   :  { %v78_v44 = vpop.permute.xlu0 %77 }
  0x90   :  { %v83_v43 = vpop.permute.xlu1 %82 }
  0x91   :  { %v88_v53 = vpop.permute.xlu0 %87 }
  0x94   :  { %v93_v50 = vpop.permute.xlu1 %92 }
  0x95   :  { %v98_v2 = vpop.permute.xlu0 %97 }
  0x98   :  { %v103_v63 = vpop.permute.xlu1 %102 }
  0x99   :  { %v108_v14 = vpop.permute.xlu0 %107 }
  0x9c   :  { %v113_v11 = vpop.permute.xlu1 %112 }
  0x9d   :  { %v118_v27 = vpop.permute.xlu0 %117 }
  0xa0   :  { %v123_v24 = vpop.permute.xlu1 %122 }
  0xa4   :  { %v133_v36 = vpop.permute.xlu1 %132 }
  0xdb   :  { %v494_v45 = vpop.f32.mrb[0].mxu0 }
  0xdc   :  { %v256_v46 = vadd.f32 %v494_v45, %v63_v42  ;;  %v250_v47 = vpop.f32.mrb[1].mxu0 }
  0xdd   :  { %v251_v48 = vadd.f32 %v250_v47, %v58_v40  ;;  %v128_v40 = vpop.permute.xlu0 %127 }
  0xde   :  { %v330_v49 = vmax.f32 %v256_v46, 0.0 }
  0xdf   :  { %v329_v51 = vmax.f32 %v251_v48, 0.0  ;;  %v497_v52 = vpop.f32.mrb[2].mxu0  ;;  %v345_v48 = vld [vmem:[%s792_s3] sm:$0xf] }
  0xe0   :  { %v266_v54 = vadd.f32 %v497_v52, %v73_v41  ;;  %v260_v55 = vpop.f32.mrb[3].mxu0 }
  0xe1   :  { %v261_v56 = vadd.f32 %v260_v55, %v68_v39  ;;  %v556_v57 = vpack.c.bf16 %v330_v49, %v329_v51  ;;  %v350_v49 = vpop.permute.xlu0 %349 }
  0xe2   :  { %v332_v58 = vmax.f32 %v266_v54, 0.0 }
  0xe3   :  { %v331_v59 = vmax.f32 %v261_v56, 0.0  ;;  %v500_v60 = vpop.f32.mrb[4].mxu0  ;;  %557 = vmatpush3.bf16.msra.mxu1 %v556_v57 }
  0xe4   :  { %v276_v61 = vadd.f32 %v500_v60, %v83_v43  ;;  %v270_v62 = vpop.f32.mrb[5].mxu0  ;;  %558 = vmatprep.subr.bf16.mxu1 %v611_v37 }
  0xe5   :  { %v559_v0 = vpack.c.bf16 %v332_v58, %v331_v59  ;;  %v271_v1 = vadd.f32 %v270_v62, %v78_v44 }
  0xe6   :  { %v334_v3 = vmax.f32 %v276_v61, 0.0 }
  0xe7   :  { %v333_v4 = vmax.f32 %v271_v1, 0.0  ;;  %v503_v5 = vpop.f32.mrb[6].mxu0  ;;  %560 = vmatpush3.bf16.msra.mxu1 %v559_v0 }
  0xe8   :  { %v286_v6 = vadd.f32 %v503_v5, %v93_v50  ;;  %v280_v7 = vpop.f32.mrb[7].mxu0  ;;  %561 = vmatprep.subr.bf16.mxu1 %v611_v37 }
  0xe9   :  { %v562_v8 = vpack.c.bf16 %v334_v3, %v333_v4  ;;  %v281_v9 = vadd.f32 %v280_v7, %v88_v53 }
  0xea   :  { %v336_v10 = vmax.f32 %v286_v6, 0.0 }
  0xeb   :  { %v335_v12 = vmax.f32 %v281_v9, 0.0  ;;  %v506_v13 = vpop.f32.mrb[8].mxu0  ;;  %563 = vmatpush3.bf16.msra.mxu1 %v562_v8 }
  0xec   :  { %v296_v15 = vadd.f32 %v506_v13, %v103_v63  ;;  %v290_v16 = vpop.f32.mrb[9].mxu0  ;;  %564 = vmatprep.subr.bf16.mxu1 %v611_v37 }
  0xed   :  { %v565_v17 = vpack.c.bf16 %v336_v10, %v335_v12  ;;  %v291_v18 = vadd.f32 %v290_v16, %v98_v2 }
  0xee   :  { %v338_v19 = vmax.f32 %v296_v15, 0.0 }
  0xef   :  { %v337_v20 = vmax.f32 %v291_v18, 0.0  ;;  %v509_v21 = vpop.f32.mrb[10].mxu0  ;;  %566 = vmatpush3.bf16.msra.mxu1 %v565_v17 }
  0xf0   :  { %v306_v22 = vadd.f32 %v509_v21, %v113_v11  ;;  %v300_v23 = vpop.f32.mrb[11].mxu0  ;;  %567 = vmatprep.subr.bf16.mxu1 %v611_v37 }
  0xf1   :  { %v568_v25 = vpack.c.bf16 %v338_v19, %v337_v20  ;;  %v301_v26 = vadd.f32 %v300_v23, %v108_v14 }
  0xf2   :  { %v340_v28 = vmax.f32 %v306_v22, 0.0 }
  0xf3   :  { %v339_v29 = vmax.f32 %v301_v26, 0.0  ;;  %v512_v30 = vpop.f32.mrb[12].mxu0  ;;  %569 = vmatpush3.bf16.msra.mxu1 %v568_v25 }
  0xf4   :  { %v316_v31 = vadd.f32 %v512_v30, %v123_v24  ;;  %v310_v32 = vpop.f32.mrb[13].mxu0  ;;  %570 = vmatprep.subr.bf16.mxu1 %v611_v37 }
  0xf5   :  { %v571_v33 = vpack.c.bf16 %v340_v28, %v339_v29  ;;  %v311_v34 = vadd.f32 %v310_v32, %v118_v27 }
  0xf6   :  { %v342_v35 = vmax.f32 %v316_v31, 0.0 }
  0xf7   :  { %v341_v38 = vmax.f32 %v311_v34, 0.0  ;;  %v515_v39 = vpop.f32.mrb[14].mxu0  ;;  %572 = vmatpush3.bf16.msra.mxu1 %v571_v33 }
  0xf8   :  { %v326_v41 = vadd.f32 %v515_v39, %v133_v36  ;;  %v320_v42 = vpop.f32.mrb[15].mxu0  ;;  %573 = vmatprep.subr.bf16.mxu1 %v611_v37 }
  0xf9   :  { %v574_v43 = vpack.c.bf16 %v342_v35, %v341_v38  ;;  %v321_v44 = vadd.f32 %v320_v42, %v128_v40 }
  0xfa   :  { %v344_v45 = vmax.f32 %v326_v41, 0.0 }
  0xfb   :  { %v343_v46 = vmax.f32 %v321_v44, 0.0  ;;  %575 = vmatpush3.bf16.msra.mxu1 %v574_v43 }
  0xfc   :  { %576 = vmatprep.subr.bf16.mxu1 %v611_v37 }
  0xfd   :  { %v577_v47 = vpack.c.bf16 %v344_v45, %v343_v46 }
  0xff   :  { %578 = vmatpush3.bf16.msra.mxu1 %v577_v47 }
 0x102   :  { %549 = vmatmul.mubr.f32.vlgmr.msra.gmra.mrb[0].mxu1 %v345_v48 }
 0x1d5   :  { %v418_v50 = vpop.f32.mrb[0].mxu1 }
 0x1d6   :  { %v419_v51 = vadd.f32 %v418_v50, %v350_v49  ;;  %v550_v52 = vpop.f32.mrb[1].mxu1 }
 0x1d8   :  { %422 = vst [vmem:[#allocation2] sm:$0xf] %v419_v51 }
 0x1d9   :  { %597 = shalt.err (!%p594_p4)
}
 0x1da   :  { %s598_s3 = scalar_lea.hbm %s794_s5, 64 }
 0x1db   :  { %p599_p5 = scmp.ne.s32.totalorder %s794_s5, %s598_s3  ;;  %p602_p6 = scmp.lt.u32.totalorder %s598_s3, %s794_s5 }
 0x1dd   :  { %p604_p7 = pnand %p602_p6, %p599_p5 }
 0x1df   :  { %607 = shalt.err (!%p604_p7)
}
 0x1e0   :  { %432 = dma.vmem_to_hbm [thread:$0]  %s430_s10, 64, %s794_s5, [#allocation3]  }
 0x1e1   :  { %608 = dma.done.wait [#allocation3], 64  }
 0x1e2   :  { %609 = vsyncadd [#allocation3], 4294967232 }
 0x1e3   :  { %436 = vsyncpa [#allocation3], 1 }

</bundles_post_ra>
